<compile_context>
chip_gen: v5e
topology: v5e:2x2
jax: 0.10.0
libtpu: 0.0.40
codegen_flags: <defaults>
</compile_context>

<pallas_src>
import jax
import jax.numpy as jnp
from jax.experimental import pallas as pl
from jax.experimental.pallas import tpu as pltpu


def _round_up(v, m):
    return ((v + m - 1) // m) * m


def _vmem_capacity_bytes():
    """Trace-time HW query; conservative 64 MiB (v7x per-TC) fallback."""
    try:
        cap = int(pltpu.get_tpu_info().vmem_capacity_bytes)
        if cap > 0:
            return cap
    except Exception:  # safe fallback, only affects tile sizing
        pass
    return 64 * 1024 * 1024


# --------------------------------------------------------------------------
# Kernels
# --------------------------------------------------------------------------
def _ff_kernel_resident(x_ref, w1_ref, b1_ref, w2_ref, b2_ref, o_ref):
    """Both [D,H]/[H,D] weight slabs resident in VMEM; 1-D grid over rows.

    bf16 MXU inputs, f32 accumulation; bias/relu/residual epilogue in f32.
    The hidden activation stays in vregs (no VMEM scratch round-trip).
    """
    x = x_ref[...]                                              # f32 (tm, D)
    h = jnp.dot(x.astype(jnp.bfloat16), w1_ref[...],
                preferred_element_type=jnp.float32)
    h = jnp.maximum(h + b1_ref[...], 0.0)                       # f32 (tm, H)
    y = jnp.dot(h.astype(jnp.bfloat16), w2_ref[...],
                preferred_element_type=jnp.float32)
    o_ref[...] = (jnp.maximum(y + b2_ref[...], 0.0) + x).astype(o_ref.dtype)


def _ff_kernel_tiled(x_ref, w1_ref, b1_ref, w2_ref, b2_ref, o_ref):
    """Hidden-dim tiled path for large D.

    Grid = (row tiles, hidden tiles). The hidden axis is the reduction (K) axis
    of the second matmul, marked "arbitrary"; the f32 output block is resident
    across it and used directly as the accumulator (output dtype is f32).
    The x tile's block index is constant across the hidden axis, so it stays
    resident in VMEM and is only DMA'd once per row tile.
    """
    j = pl.program_id(1)

    @pl.when(j == 0)
    def _():
        o_ref[...] = jnp.zeros_like(o_ref)

    x = x_ref[...]                                              # f32 (tm, D)
    h = jnp.dot(x.astype(jnp.bfloat16), w1_ref[...],           # (tm, th)
                preferred_element_type=jnp.float32)
    h = jnp.maximum(h + b1_ref[...], 0.0)
    o_ref[...] += jnp.dot(h.astype(jnp.bfloat16), w2_ref[...],  # (tm, D)
                          preferred_element_type=jnp.float32)

    @pl.when(j == pl.num_programs(1) - 1)
    def _():
        o_ref[...] = (jnp.maximum(o_ref[...] + b2_ref[...], 0.0)
                      + x).astype(o_ref.dtype)


# --------------------------------------------------------------------------
# pallas_call builders
# --------------------------------------------------------------------------
def _build_resident_call(M, D, H, tm, out_dtype, vmem_limit):
    grid = (pl.cdiv(M, tm),)
    return pl.pallas_call(
        _ff_kernel_resident,
        out_shape=jax.ShapeDtypeStruct((M, D), out_dtype),
        grid_spec=pltpu.PrefetchScalarGridSpec(
            num_scalar_prefetch=0,
            grid=grid,
            in_specs=[
                pl.BlockSpec((tm, D), lambda i: (i, 0)),   # x row tile (streamed)
                pl.BlockSpec((D, H), lambda i: (0, 0)),    # W1 (resident, bf16)
                pl.BlockSpec((1, H), lambda i: (0, 0)),    # b1 (f32)
                pl.BlockSpec((H, D), lambda i: (0, 0)),    # W2 (resident, bf16)
                pl.BlockSpec((1, D), lambda i: (0, 0)),    # b2 (f32)
            ],
            out_specs=pl.BlockSpec((tm, D), lambda i: (i, 0)),
        ),
        compiler_params=pltpu.CompilerParams(
            dimension_semantics=("parallel",),
            vmem_limit_bytes=vmem_limit,
        ),
    )


def _build_tiled_call(M, D, H, tm, th, out_dtype, vmem_limit):
    grid = (pl.cdiv(M, tm), H // th)
    return pl.pallas_call(
        _ff_kernel_tiled,
        out_shape=jax.ShapeDtypeStruct((M, D), out_dtype),
        grid_spec=pltpu.PrefetchScalarGridSpec(
            num_scalar_prefetch=0,
            grid=grid,
            in_specs=[
                pl.BlockSpec((tm, D), lambda i, j: (i, 0)),   # x tile (resident over j)
                pl.BlockSpec((D, th), lambda i, j: (0, j)),   # W1[:, j-block] (bf16)
                pl.BlockSpec((1, th), lambda i, j: (0, j)),   # b1[j-block]
                pl.BlockSpec((th, D), lambda i, j: (j, 0)),   # W2[j-block, :] (bf16)
                pl.BlockSpec((1, D), lambda i, j: (0, 0)),    # b2
            ],
            out_specs=pl.BlockSpec((tm, D), lambda i, j: (i, 0)),
        ),
        compiler_params=pltpu.CompilerParams(
            dimension_semantics=("parallel", "arbitrary"),
            vmem_limit_bytes=vmem_limit,
        ),
    )


# --------------------------------------------------------------------------
# Config selection
# --------------------------------------------------------------------------
def _choose_config(M, D, H, tm_req, budget):
    """Pick (path, tm, th) so the conservative VMEM footprint fits `budget`."""
    tm_cap = _round_up(M, 8)
    if M > 8:
        # Keep >= 2 grid steps along rows: needed for pipeline overlap and so
        # dimension_semantics=("parallel",...) can use both TCs on v7x.
        tm_cap = min(tm_cap, _round_up(pl.cdiv(M, 2), 8))
    tm = max(8, min(_round_up(tm_req, 8), tm_cap))

    def act_bytes(tm_):            # double-buffered f32 x tile + out tile
        return 2 * (2 * tm_ * D * 4)

    def tmp_bytes(tm_, h_):        # in-kernel temporaries (x_bf16, h, h_bf16, y)
        return tm_ * (6 * D + 6 * h_)

    # Resident path: both weight slabs in VMEM (counted double-buffered).
    resident_w = 2 * 2 * (D * H) * 2 + 2 * (H + D) * 4
    tm_min = min(tm, 256)
    if resident_w + act_bytes(tm_min) + tmp_bytes(tm_min, H) <= budget:
        while tm > 8 and resident_w + act_bytes(tm) + tmp_bytes(tm, H) > budget:
            tm = max(8, _round_up(tm // 2, 8))
        return "resident", tm, H

    # Hidden-tiled path: th multiple of 128, divides H, prefer 512/256 so the
    # per-step K/N fills v6e/v7x's 256-wide MXU.
    th = 512 if H % 512 == 0 else (256 if H % 256 == 0 else 128)

    def tiled_w(th_):
        return 2 * 2 * (D * th_) * 2 + 2 * (th_ + D) * 4

    while th > 128 and tiled_w(th) > budget // 2:
        th //= 2
    while tm > 8 and tiled_w(th) + act_bytes(tm) + tmp_bytes(tm, th) > budget:
        tm = max(8, _round_up(tm // 2, 8))
    return "tiled", tm, th


# --------------------------------------------------------------------------
# Public API
# --------------------------------------------------------------------------
def prepare_ffn_params(w1, b1, w2, b2):
    """Pack FFN parameters ONCE (at init time, not per step).

    Pads the hidden dim to a lane-dense multiple of 128 (zero padding keeps the
    math exact) and casts weights to bf16 (halves weight HBM traffic + VMEM).
    w1/w2 are stored [D_in, D_out] (torch weight transposed).
    """
    D = w1.shape[0]
    H = max(128, _round_up(D, 128))
    w1p = jnp.pad(w1, ((0, 0), (0, H - D))).astype(jnp.bfloat16)        # [D, H]
    b1p = jnp.pad(b1.reshape(1, D).astype(jnp.float32),
                  ((0, 0), (0, H - D)))                                  # [1, H]
    w2p = jnp.pad(w2, ((0, H - D), (0, 0))).astype(jnp.bfloat16)        # [H, D]
    b2p = b2.reshape(1, D).astype(jnp.float32)                           # [1, D]
    return (w1p, b1p, w2p, b2p)


def feed_forward(x, packed_params, *, tm=1024, _force_path=None, _force_th=None):
    """x: [M, D] float32. packed_params: output of prepare_ffn_params."""
    w1p, b1p, w2p, b2p = packed_params
    M, D = x.shape
    H = w1p.shape[1]
    assert w1p.shape == (D, H) and w2p.shape == (H, D)
    assert b1p.shape == (1, H) and b2p.shape == (1, D)
    x = x.astype(jnp.float32)

    cap = _vmem_capacity_bytes()
    budget = int(cap * 0.75)       # footprint target (headroom for compiler scratch)
    vmem_limit = int(cap * 0.85)   # ~54 MiB on v7x (64 MiB), ~108 MiB on v5e/v6e (128 MiB)

    path, tm_sel, th = _choose_config(M, D, H, tm, budget)
    if _force_path is not None:
        path = _force_path
    if _force_th is not None:
        th = _force_th

    if path == "resident":
        call = _build_resident_call(M, D, H, tm_sel, x.dtype, vmem_limit)
    else:
        call = _build_tiled_call(M, D, H, tm_sel, th, x.dtype, vmem_limit)
    return call(x, w1p, b1p, w2p, b2p)


def feed_forward_module(x_bsd, w1, b1, w2, b2):
    """PyTorch-style (B, S, D) input -> (B, S, D). Packs weights internally
    (for repeated calls, use prepare_ffn_params once + feed_forward)."""
    B, S, D = x_bsd.shape
    packed = prepare_ffn_params(w1, b1, w2, b2)
    out = feed_forward(x_bsd.reshape(B * S, D), packed)
    return out.reshape(B, S, D)


# --------------------------------------------------------------------------
# Self-test
# --------------------------------------------------------------------------
if __name__ == "__main__":
    dim = 32
    batch, seq = 2, 8

    key = jax.random.PRNGKey(0)
    kx, kw1, kb1, kw2, kb2 = jax.random.split(key, 5)

    x = jax.random.normal(kx, (batch, seq, dim), dtype=jnp.float32)
    # Deterministic synthetic nn.Linear(dim, dim) x2 parameters, stored
    # [D_in, D_out] so the kernel does x @ W + b.
    scale = 1.0 / jnp.sqrt(dim)
    w1 = jax.random.uniform(kw1, (dim, dim), jnp.float32, -scale, scale)
    b1 = jax.random.uniform(kb1, (dim,), jnp.float32, -scale, scale)
    w2 = jax.random.uniform(kw2, (dim, dim), jnp.float32, -scale, scale)
    b2 = jax.random.uniform(kb2, (dim,), jnp.float32, -scale, scale)

    out = feed_forward_module(x, w1, b1, w2, b2)
    out = jax.block_until_ready(out)
    assert out.shape == x.shape

    def ref_bf16(x2d_, w1_, b1_, w2_, b2_):
        # Reference with matching bf16-input / f32-accumulation matmul precision.
        h = jnp.maximum(
            jnp.dot(x2d_.astype(jnp.bfloat16), w1_.astype(jnp.bfloat16),
                    preferred_element_type=jnp.float32) + b1_, 0.0)
        y = jnp.dot(h.astype(jnp.bfloat16), w2_.astype(jnp.bfloat16),
                    preferred_element_type=jnp.float32) + b2_
        return jnp.maximum(y, 0.0) + x2d_

    x2d = x.reshape(-1, dim)
    ref = ref_bf16(x2d, w1, b1, w2, b2).reshape(batch, seq, dim)
    assert jnp.allclose(out, ref, atol=1e-3, rtol=1e-3)

    # Loose check against pure-f32 math as a semantic sanity check.
    ref_f32 = (jnp.maximum(jnp.maximum(x2d @ w1 + b1, 0.0) @ w2 + b2, 0.0)
               + x2d).reshape(batch, seq, dim)
    assert jnp.allclose(out, ref_f32, atol=5e-2, rtol=5e-2)

    # Exercise the hidden-tiled (large-D) path on a small problem by forcing it
    # (dim=256, th=128 -> 2 hidden blocks, validates the reduction/accumulate).
    dim2 = 256
    kx2, kw12, kb12, kw22, kb22 = jax.random.split(jax.random.PRNGKey(1), 5)
    x2 = jax.random.normal(kx2, (batch * seq, dim2), dtype=jnp.float32)
    s2 = 1.0 / jnp.sqrt(dim2)
    w1_2 = jax.random.uniform(kw12, (dim2, dim2), jnp.float32, -s2, s2)
    b1_2 = jax.random.uniform(kb12, (dim2,), jnp.float32, -s2, s2)
    w2_2 = jax.random.uniform(kw22, (dim2, dim2), jnp.float32, -s2, s2)
    b2_2 = jax.random.uniform(kb22, (dim2,), jnp.float32, -s2, s2)
    packed2 = prepare_ffn_params(w1_2, b1_2, w2_2, b2_2)
    out2 = jax.block_until_ready(
        feed_forward(x2, packed2, _force_path="tiled", _force_th=128))
    ref2 = ref_bf16(x2, w1_2, b1_2, w2_2, b2_2)
    assert jnp.allclose(out2, ref2, atol=1e-3, rtol=1e-3)

    print("KERNEL_OK")
</pallas_src>

<mosaic_0001>
module attributes {stable_mosaic.version = 11 : i64} {
  func.func @_ff_kernel_resident(%arg0: i32, %arg1: memref<8x32xf32, #tpu.memory_space<vmem>>, %arg2: memref<32x128xbf16, #tpu.memory_space<vmem>>, %arg3: memref<1x128xf32, #tpu.memory_space<vmem>>, %arg4: memref<128x32xbf16, #tpu.memory_space<vmem>>, %arg5: memref<1x32xf32, #tpu.memory_space<vmem>>, %arg6: memref<8x32xf32, #tpu.memory_space<vmem>>) attributes {dimension_semantics = [#tpu.dimension_semantics<parallel>], iteration_bounds = array<i64: 2>, scalar_prefetch = 0 : i64, scratch_operands = 0 : i64, tpu.core_type = #tpu.core_type<tc>, window_params = [{transform_indices = @transform_0, window_bounds = array<i64: 8, 32>}, {pipeline_mode = #tpu.pipeline_mode<synchronous>, transform_indices = @transform_1, window_bounds = array<i64: 32, 128>}, {pipeline_mode = #tpu.pipeline_mode<synchronous>, transform_indices = @transform_2, window_bounds = array<i64: 1, 128>}, {pipeline_mode = #tpu.pipeline_mode<synchronous>, transform_indices = @transform_3, window_bounds = array<i64: 128, 32>}, {pipeline_mode = #tpu.pipeline_mode<synchronous>, transform_indices = @transform_4, window_bounds = array<i64: 1, 32>}, {transform_indices = @transform_5, window_bounds = array<i64: 8, 32>}]} {
    %c0 = arith.constant 0 : index
    %c0_0 = arith.constant 0 : index
    %0 = vector.load %arg1[%c0, %c0_0] : memref<8x32xf32, #tpu.memory_space<vmem>>, vector<8x32xf32>
    %1 = arith.truncf %0 : vector<8x32xf32> to vector<8x32xbf16>
    %c0_1 = arith.constant 0 : index
    %c0_2 = arith.constant 0 : index
    %2 = vector.load %arg2[%c0_1, %c0_2] : memref<32x128xbf16, #tpu.memory_space<vmem>>, vector<32x128xbf16>
    %cst = arith.constant dense<0.000000e+00> : vector<8x128xf32>
    %3 = tpu.matmul %1, %2, %cst {dimension_numbers = #tpu.dot_dimension_numbers<[1], [0], [0], [1], [0, 0, 1, 1], [], []>} : vector<8x32xbf16>, vector<32x128xbf16>, vector<8x128xf32> -> vector<8x128xf32>
    %c0_3 = arith.constant 0 : index
    %c0_4 = arith.constant 0 : index
    %4 = vector.load %arg3[%c0_3, %c0_4] : memref<1x128xf32, #tpu.memory_space<vmem>>, vector<1x128xf32>
    %5 = vector.broadcast %4 : vector<1x128xf32> to vector<8x128xf32>
    %6 = arith.addf %3, %5 : vector<8x128xf32>
    %cst_5 = arith.constant 0.000000e+00 : f32
    %7 = vector.broadcast %cst_5 : f32 to vector<8x128xf32>
    %8 = arith.maximumf %6, %7 : vector<8x128xf32>
    %9 = arith.truncf %8 : vector<8x128xf32> to vector<8x128xbf16>
    %c0_6 = arith.constant 0 : index
    %c0_7 = arith.constant 0 : index
    %10 = vector.load %arg4[%c0_6, %c0_7] : memref<128x32xbf16, #tpu.memory_space<vmem>>, vector<128x32xbf16>
    %cst_8 = arith.constant dense<0.000000e+00> : vector<8x32xf32>
    %11 = tpu.matmul %9, %10, %cst_8 {dimension_numbers = #tpu.dot_dimension_numbers<[1], [0], [0], [1], [0, 0, 1, 1], [], []>} : vector<8x128xbf16>, vector<128x32xbf16>, vector<8x32xf32> -> vector<8x32xf32>
    %c0_9 = arith.constant 0 : index
    %c0_10 = arith.constant 0 : index
    %12 = vector.load %arg5[%c0_9, %c0_10] : memref<1x32xf32, #tpu.memory_space<vmem>>, vector<1x32xf32>
    %13 = vector.broadcast %12 : vector<1x32xf32> to vector<8x32xf32>
    %14 = arith.addf %11, %13 : vector<8x32xf32>
    %cst_11 = arith.constant 0.000000e+00 : f32
    %15 = vector.broadcast %cst_11 : f32 to vector<8x32xf32>
    %16 = arith.maximumf %14, %15 : vector<8x32xf32>
    %17 = arith.addf %16, %0 : vector<8x32xf32>
    %c0_12 = arith.constant 0 : index
    %c0_13 = arith.constant 0 : index
    %18 = vector.load %arg6[%c0_12, %c0_13] : memref<8x32xf32, #tpu.memory_space<vmem>>, vector<8x32xf32>
    tpu.vector_store %arg6[%c0_12, %c0_13], %17 {strides = array<i32>} : memref<8x32xf32, #tpu.memory_space<vmem>>, vector<8x32xf32>,
    return
  }
  func.func @transform_0(%arg0: i32) -> (i32, i32) {
    %c0_i32 = arith.constant 0 : i32
    %c0_i32_0 = arith.constant 0 : i32
    return %arg0, %c0_i32 : i32, i32
  }
  func.func @transform_1(%arg0: i32) -> (i32, i32) {
    %c0_i32 = arith.constant 0 : i32
    %c0_i32_0 = arith.constant 0 : i32
    %c0_i32_1 = arith.constant 0 : i32
    return %c0_i32, %c0_i32_0 : i32, i32
  }
  func.func @transform_2(%arg0: i32) -> (i32, i32) {
    %c0_i32 = arith.constant 0 : i32
    %c0_i32_0 = arith.constant 0 : i32
    %c0_i32_1 = arith.constant 0 : i32
    return %c0_i32, %c0_i32_0 : i32, i32
  }
  func.func @transform_3(%arg0: i32) -> (i32, i32) {
    %c0_i32 = arith.constant 0 : i32
    %c0_i32_0 = arith.constant 0 : i32
    %c0_i32_1 = arith.constant 0 : i32
    return %c0_i32, %c0_i32_0 : i32, i32
  }
  func.func @transform_4(%arg0: i32) -> (i32, i32) {
    %c0_i32 = arith.constant 0 : i32
    %c0_i32_0 = arith.constant 0 : i32
    %c0_i32_1 = arith.constant 0 : i32
    return %c0_i32, %c0_i32_0 : i32, i32
  }
  func.func @transform_5(%arg0: i32) -> (i32, i32) {
    %c0_i32 = arith.constant 0 : i32
    %c0_i32_0 = arith.constant 0 : i32
    return %arg0, %c0_i32 : i32, i32
  }
}

</mosaic_0001>

<bundles_post_ra>
// kernel: tpu_custom_call.1
= control target key start
LH: loop header
LB: loop body
LE: loop exit
PB: predicated region body
PF: predicated region fallthrough
CT: control target
= control target key end

     0   :  { %10 = vsyncpa [#allocation3], 0  ;;  %s740_s0 = inlined_call_operand.vmem [shape: f32[16,32], index: 0, kind: input, shape index: {}]   ;;  %s741_s1 = inlined_call_operand.vmem [shape: bf16[32,128], index: 1, kind: input, shape index: {}]   ;;  %s742_s2 = inlined_call_operand.vmem [shape: f32[1,128], index: 2, kind: input, shape index: {}]   ;;  %s743_s3 = inlined_call_operand.vmem [shape: bf16[128,32], index: 3, kind: input, shape index: {}]   ;;  %s744_s4 = inlined_call_operand.vmem [shape: f32[1,32], index: 4, kind: input, shape index: {}]   ;;  %s745_s5 = inlined_call_operand.hbm [shape: f32[16,32], index: 5, kind: output, shape index: {}]  }
   0x1   :  { %12 = vsyncpa [#allocation3 + $0x1], 0  ;;  %s617_s18 = smov 0   ;;  %s619_s19 = smov 0  }
   0x2   :  { %s621_s20 = smov 0   ;;  %s623_s21 = smov 0  }
   0x3 LB: > { %s638_s22 = sadd.s32 4294967295, %s585_s21   ;;  %s421_s23 = sadd.s32 4294967294, %s585_s21   ;;  %s585_s21 = sphi %s623_s21, %s751_s21   ;;  %s581_s20 = sphi %s621_s20, %s750_s20   ;;  %s577_s19 = sphi %s619_s19, %s749_s19   ;;  %s573_s18 = sphi %s617_s18, %s748_s18  }
   0x4   : > { %s642_s24 = sadd.s32 1, %s585_s21   ;;  %s135_s25 = sadd.s32 1, %s581_s20 }
   0x5   : > { %s132_s26 = ssub.s32 %s585_s21, %s642_s24  ;;  %p145_p0 = scmp.ne.s32.totalorder %s581_s20, %s577_s19 }
   0x6   : > { %p133_p1 = scmp.eq.s32.totalorder %s132_s26, 0  ;;  %p146_p2 = scmp.eq.s32.totalorder %s638_s22, 1 }
   0x7   : > { %p151_p3 = scmp.ne.s32.totalorder %s577_s19, %s573_s18  ;;  %p152_p4 = scmp.eq.s32.totalorder %s421_s23, 1 }
   0x8   : > { %s653_s27 = scalar_select %p133_p1, %s581_s20, %s135_s25  }
   0x9   : > { %p655_p5 = por %p146_p2, %p145_p0  ;;  %p659_p6 = por %p152_p4, %p151_p3 }
   0xa   : > { %p424_p7 = scmp.ge.s32.totalorder %s585_s21, 1  ;;  %p189_p8 = scmp.lt.s32.totalorder %s585_s21, 3 }
   0xc   : > { %p190_p9 = pnand %p424_p7, %p189_p8 }
   0xd   : > { %p216_p10 = scmp.lt.s32.totalorder (!%p190_p9), %s638_s22, 1  ;;  %s213_s16 = sand.u32 (!%p190_p9), 1, %s577_s19  }
   0xe   : > { %193 = sbr.rel (%p190_p9) target bundleno = 295 (0x127), region = 40  ;;  %s469_s23 = sshll.u32 (!%p190_p9), %s638_s22, 3 }
   0xf   : > { %s357_s7 = scalar_lea.hbm (!%p190_p9), %s745_s5, %s469_s23  ;;  %s543_s15 = scalar_lea.hbm (!%p190_p9), %s745_s5, 16 }
  0x10   : > { %s361_s10 = sshll.u32 (!%p190_p9), %s357_s7, 4  ;;  %s362_s10 = int_to_ptr.hbm [resolvable:$true] %s361_s10 }
  0x13   : > { %v473_v0 = vld [vmem:[%s741_s1 + $0x8] sm:$0xff]  ;;  %v481_v1 = vld [vmem:[%s743_s3 + $0x38] sm:$0xff]  ;;  %v472_v2 = vld [vmem:[%s741_s1] sm:$0xff]  ;;  %s217_s11 = scalar_select %p216_p10, %s638_s22, 1  ;;  %vm243_vm0 = vcmask 261120  }
  0x14   : > { %253 = vmatpush.bf16.msra.mxu0 %v473_v0  ;;  %330 = vmatpush.bf16.msra.mxu1 %v481_v1  ;;  %v480_v3 = vld [vmem:[%s743_s3 + $0x30] sm:$0xff]  ;;  %v479_v5 = vld [vmem:[%s743_s3 + $0x28] sm:$0xff]  ;;  %v478_v7 = vld [vmem:[%s743_s3 + $0x20] sm:$0xff]  ;;  %s347_s22 = scalar_lea.sflag [#allocation3], %s213_s16 }
  0x15   : > { %s426_s14 = sshll.u32 %s217_s11, 3  ;;  %v477_v8 = vld [vmem:[%s743_s3 + $0x18] sm:$0xff]  ;;  %v476_v9 = vld [vmem:[%s743_s3 + $0x10] sm:$0xff]  ;;  %v475_v10 = vld [vmem:[%s743_s3 + $0x8] sm:$0xff]  ;;  %s537_s11 = sshra.s32 %s362_s10, 4  ;;  %s538_s11 = int_to_ptr.hbm [resolvable:$true] %s537_s11 }
  0x16   : > { %s219_s17 = scalar_lea.vmem %s740_s0, %s426_s14  ;;  %v474_v11 = vld [vmem:[%s743_s3] sm:$0xff]  ;;  %s539_s12 = scalar_lea.hbm %s538_s11, 8 }
  0x17   : > { %v221_v4 = vld [vmem:[%s219_s17] sm:$0xff]  ;;  %s425_s17 = sshll.u32 %s213_s16, 3  ;;  %p540_p11 = scmp.ne.s32.totalorder %s538_s11, %s539_s12 }
  0x18   : > { %254 = vmatpush.bf16.msra.mxu0 %v472_v2  ;;  %331 = vmatpush.bf16.msra.mxu1 %v480_v3  ;;  %v222_v6 = vpack.c.bf16 %v221_v4, %v221_v4  ;;  %v521_v12 = vld [vmem:[%s742_s2] ss:$0 sm:$0xff]  ;;  %s215_s8 = scalar_lea.vmem [#allocation2], %s425_s17  ;;  %p544_p0 = scmp.lt.s32.totalorder %s538_s11, %s745_s5 }
  0x19   : > { %v522_v18 = vld [vmem:[%s744_s4] ss:$0 sm:$0xff]  ;;  %s359_s9 = sshll.u32 %s215_s8, 4  ;;  %p541_p12 = pnand %p540_p11, %p655_p5  ;;  %s360_s9 = int_to_ptr.vmem [resolvable:$true] %s359_s9 }
  0x1a   : > { %p545_p1 = scmp.lt.s32.totalorder %s543_s15, %s539_s12 }
  0x1b   : > { %435 = vmatmul.msk.bf16.vlgmr.msra.gmra.mxu0 %vm243_vm0, %v222_v6  ;;  %p542_p13 = pneg %p541_p12 }
  0x1c   : > { %332 = vmatpush.bf16.msra.mxu1 %v479_v5  ;;  %p546_p2 = por %p545_p1, %p544_p0 }
  0x1e   : > { %p547_p3 = pnand %p546_p2, %p542_p13 }
  0x20   : > { %333 = vmatpush.bf16.msra.mxu1 %v478_v7 }
  0x24   : > { %334 = vmatpush.bf16.msra.mxu1 %v477_v8 }
  0x28   : > { %335 = vmatpush.bf16.msra.mxu1 %v476_v9 }
  0x2c   : > { %336 = vmatpush.bf16.msra.mxu1 %v475_v10 }
  0x30   : > { %337 = vmatpush.bf16.msra.mxu1 %v474_v11 }
  0x98   : > { %v256_v13 = vpop.f32.mrf.mxu0 }
  0x99   : > { %v257_v14 = vadd.f32 %v521_v12, %v256_v13 }
  0x9b   : > { %v260_v15 = vmax.f32 %v257_v14, 0.0 }
  0x9d   : > { %v261_v16 = vpack.c.bf16 %v260_v15, %v260_v15 }
  0x9f   : > { %338 = vmatmul.bf16.vlgmr.msra.gmra.mxu1 %v261_v16 }
  0xa0   : > { %v258_v17 = vpop.f32.mrf.mxu0 }
 0x11c   : > { %v339_v19 = vpop.f32.mrf.mxu1 }
 0x11d   : > { %v340_v20 = vadd.f32 %v522_v18, %v339_v19 }
 0x11f   : > { %v343_v21 = vmax.f32 %v340_v20, 0.0 }
 0x121   : > { %v344_v22 = vadd.f32 %v343_v21, %v221_v4 }
 0x123   : > { %345 = vst.msk [vmem:[%s215_s8] sm:$0xff] %vm243_vm0, %v344_v22 }
 0x124   : > { %v341_v23 = vpop.f32.mrf.mxu1 }
 0x125   : > { %550 = shalt.err (!%p547_p3)
}
 0x126   : > { %482 = dma.vmem_to_hbm [thread:$0]  (%p655_p5), %s360_s9, 128, %s362_s10, %s347_s22  }
 0x127 PF: > { %p488_p4 = scmp.ge.s32.totalorder %s585_s21, 2  ;;  %s373_s16 = sand.u32 1, %s573_s18  }
 0x128   : > { %s374_s25 = scalar_lea.sflag [#allocation3], %s373_s16 }
 0x129   : > { %p485_p7 = pnand %p488_p4, %p659_p6 }
 0x12b   : > { %p486_p8 = pneg %p485_p7 }
 0x12d   : > { %568 = dma.done.wait (%p486_p8), %s374_s25, 128  }
 0x12e   : > { %570 = vsyncadd (%p486_p8), %s374_s25, 4294967168  ;;  %p15_p9 = scmp.ge.s32.totalorder %s642_s24, 4   ;;  %s748_s18 = smov %s577_s19 }
 0x12f   : > { %s749_s19 = smov %s581_s20  ;;  %s750_s20 = smov %s653_s27 }
 0x130   : > { %s751_s21 = smov %s642_s24  ;;  %17 = sbr.rel (!%p15_p9) target bundleno = 3 (0x3), region = 75 }
 0x135   :  { %380 = vsyncpa [#allocation3], 1 }
 0x136   :  { %382 = vsyncpa [#allocation3 + $0x1], 1 }

</bundles_post_ra>
